<compile_context>
chip_gen: v7x
topology: tpu7x:2x2x1
jax: 0.10.0
libtpu: 0.0.40
codegen_flags: <defaults>
</compile_context>

<pallas_src>
from functools import partial

import numpy as np
import jax
import jax.numpy as jnp
from jax import lax
from jax.experimental import pallas as pl
from jax.experimental.pallas import tpu as pltpu


# ----------------------------------------------------------------------------
# exp_rampup (identical semantics to the PyTorch module, pure python/numpy)
# ----------------------------------------------------------------------------
def exp_rampup(rampup_length):
    """Exponential rampup from https://arxiv.org/abs/1610.02242"""
    def wrapper(epoch):
        if epoch < rampup_length:
            epoch = np.clip(epoch, 0.0, rampup_length)
            phase = 1.0 - epoch / rampup_length
            return float(np.exp(-5.0 * phase * phase))
        else:
            return 1.0
    return wrapper


# ----------------------------------------------------------------------------
# Fused kernel: 1x1 conv + ReLU -> grid-point MLP -> lane-parallel SSE partials
# Layout: channels on the sublane axis, pixel tile (lanes, multiple of 128) last.
# ----------------------------------------------------------------------------
def _fused_kernel(x_ref, tgt_ref, wi_ref, bi_ref, w1_ref, b1_ref, w2_ref, b2_ref,
                  est_ref, sse_ref, *, n_inner, sub):
    i = pl.program_id(1)  # pixel-tile index (reduction axis for the SSE accumulator)

    # Resident lane-parallel SSE accumulator: same (b, 0, 0) block for every i.
    @pl.when(i == 0)
    def _init():
        sse_ref[...] = jnp.zeros_like(sse_ref)

    # Weights/biases are tiny and VMEM-resident (constant index_maps); load once.
    wi = wi_ref[...]
    bi = bi_ref[...]
    w1 = w1_ref[...]
    b1 = b1_ref[...]
    w2 = w2_ref[...]
    b2 = b2_ref[...]

    def body(j, acc):
        # Aligned sub-slice of the big DMA tile: keeps vreg pressure constant.
        j0 = pl.multiple_of(j * sub, sub)

        # model_image: 1x1 conv == channel matmul.  [Cmid,Cin] @ [Cin,sub] -> [Cmid,sub]
        x = x_ref[:, pl.ds(j0, sub)].astype(jnp.bfloat16)          # f32->bf16 on VPU
        feat = jnp.dot(wi, x, preferred_element_type=jnp.float32)
        feat = jnp.maximum(feat + bi, 0.0)

        # featuremap2gridpoint is a pure reshape: each lane column already IS a point.

        # model_point layer 1: [Hdim,Cmid] @ [Cmid,sub] -> [Hdim,sub]
        h = jnp.dot(w1, feat.astype(jnp.bfloat16),
                    preferred_element_type=jnp.float32)
        h = jnp.maximum(h + b1, 0.0)

        # model_point layer 2: [K,Hdim] @ [Hdim,sub] -> [K,sub]
        out = jnp.dot(w2, h.astype(jnp.bfloat16),
                      preferred_element_type=jnp.float32)
        out = out + b2

        # next_est sub-tile: lane-dense bf16 store (aligned lane offset, width % 128 == 0)
        est_ref[:, pl.ds(j0, sub)] = out.astype(est_ref.dtype)

        # loss partials: f32 math, lane-parallel accumulation (pure VPU).
        tgt = tgt_ref[:, pl.ds(j0, sub)].astype(jnp.float32)        # [K, sub]
        diff = out - tgt
        return acc + diff * diff

    acc0 = jnp.zeros(sse_ref.shape, jnp.float32)                    # (K, sub)
    acc = lax.fori_loop(0, n_inner, body, acc0, unroll=min(n_inner, 2))
    sse_ref[...] += acc                                             # resident VMEM block


@partial(jax.jit, static_argnames=("tile_rows", "sub_lanes"))
def fused_forward(x_nchw, target, params, rampup, *, tile_rows=4096, sub_lanes=512):
    B, Cin, H, W = x_nchw.shape
    HW = H * W
    N = B * HW
    Cmid = params["w_img"].shape[1]
    Hdim = params["w1"].shape[1]
    K = params["w2"].shape[1]
    assert target.shape == (N, K)

    tile_rows = min(tile_rows, HW)
    sub = min(sub_lanes, tile_rows)
    assert tile_rows % 128 == 0 and sub % 128 == 0, "tiles must be lane-dense (x128)"
    # TODO(synk): production H*W not divisible by tile_rows needs a padded/masked tail.
    assert HW % tile_rows == 0 and tile_rows % sub == 0
    n_tiles = HW // tile_rows
    n_inner = tile_rows // sub

    # Free view: NCHW -> (B, Cin, H*W).  No host transpose; bf16 cast happens in-kernel.
    x3 = x_nchw.reshape(B, Cin, HW)

    # Target/est layout change is unavoidable given the [N,K] interface; do it in bf16
    # (same HBM cost as the bf16 cast we want anyway; halves the kernel-side stream).
    tgt_t = target.reshape(B, HW, K).transpose(0, 2, 1).astype(jnp.bfloat16)   # (B,K,HW)

    wi_t = params["w_img"].T.astype(jnp.bfloat16)                   # [Cmid, Cin]
    w1_t = params["w1"].T.astype(jnp.bfloat16)                      # [Hdim, Cmid]
    w2_t = params["w2"].T.astype(jnp.bfloat16)                      # [K, Hdim]
    bi_t = params["b_img"].reshape(Cmid, 1).astype(jnp.float32)
    b1_t = params["b1"].reshape(Hdim, 1).astype(jnp.float32)
    b2_t = params["b2"].reshape(K, 1).astype(jnp.float32)

    kernel = partial(_fused_kernel, n_inner=n_inner, sub=sub)

    est, sse = pl.pallas_call(
        kernel,
        out_shape=(
            jax.ShapeDtypeStruct((B, K, HW), jnp.bfloat16),         # next_est (transposed)
            jax.ShapeDtypeStruct((B, K, sub), jnp.float32),         # lane-parallel SSE
        ),
        grid=(B, n_tiles),
        in_specs=[
            pl.BlockSpec((None, Cin, tile_rows), lambda b, i: (b, 0, i)),   # x tile
            pl.BlockSpec((None, K, tile_rows), lambda b, i: (b, 0, i)),     # target tile
            pl.BlockSpec((Cmid, Cin), lambda b, i: (0, 0)),                 # resident W/b
            pl.BlockSpec((Cmid, 1), lambda b, i: (0, 0)),
            pl.BlockSpec((Hdim, Cmid), lambda b, i: (0, 0)),
            pl.BlockSpec((Hdim, 1), lambda b, i: (0, 0)),
            pl.BlockSpec((K, Hdim), lambda b, i: (0, 0)),
            pl.BlockSpec((K, 1), lambda b, i: (0, 0)),
        ],
        out_specs=(
            pl.BlockSpec((None, K, tile_rows), lambda b, i: (b, 0, i)),     # est tile
            pl.BlockSpec((None, K, sub), lambda b, i: (b, 0, 0)),           # SSE (per-b)
        ),
        # Batch axis parallel (v7x megacore: each core owns its own per-b SSE block),
        # pixel-tile axis is the SSE reduction -> arbitrary.
        compiler_params=pltpu.CompilerParams(
            dimension_semantics=("parallel", "arbitrary")),
    )(x3, tgt_t, wi_t, bi_t, w1_t, b1_t, w2_t, b2_t)

    loss = jnp.sum(sse) * (rampup / float(N * K))                   # MSE * exp_rampup
    next_est = est.transpose(0, 2, 1).reshape(N, K).astype(jnp.float32)
    return loss, next_est


# ----------------------------------------------------------------------------
# ModelWithLoss wrapper (same control flow / outputs as the PyTorch module)
# ----------------------------------------------------------------------------
class ModelWithLoss:
    def __init__(self, params, tile_rows=4096, sub_lanes=512):
        self.params = params
        self.tile_rows = tile_rows
        self.sub_lanes = sub_lanes
        self.time_up = exp_rampup(50)

    def __call__(self, batch, phase, epoch=None, opt=None):
        rampup = self.time_up(epoch if epoch is not None else 0)
        loss, next_est = fused_forward(batch["input"], batch["target"], self.params,
                                       rampup, tile_rows=self.tile_rows,
                                       sub_lanes=self.sub_lanes)
        loss_stats = {"loss": loss}
        return loss, loss_stats, next_est
        # TODO(synk): the original featuremap2gridpoint / loss depend on
        # detection-specific sub-modules (opt, heatmap decoding) not defined in the
        # provided source; they are synthesized as reshape + MSE * exp_rampup here.


# ----------------------------------------------------------------------------
# Pure-JAX f32 reference for correctness checking
# ----------------------------------------------------------------------------
def _reference_forward(x_nchw, target, params, rampup):
    B, Cin, H, W = x_nchw.shape
    x = jnp.transpose(x_nchw, (0, 2, 3, 1)).reshape(B * H * W, Cin)
    feat = jnp.maximum(x @ params["w_img"] + params["b_img"], 0.0)
    h = jnp.maximum(feat @ params["w1"] + params["b1"], 0.0)
    out = h @ params["w2"] + params["b2"]
    loss = jnp.mean((out - target) ** 2) * rampup
    return loss, out


# ----------------------------------------------------------------------------
if __name__ == "__main__":
    # Small shapes: batch=2, in-channels=4, spatial=32x32, feat=32, hidden=32, K=8
    B, Cin, H, W = 2, 4, 32, 32
    Cmid, Hdim, K = 32, 32, 8
    N = B * H * W

    key = jax.random.PRNGKey(0)
    k_x, k_t, k_w0, k_w1, k_w2 = jax.random.split(key, 5)

    batch = {
        "input": jax.random.normal(k_x, (B, Cin, H, W), dtype=jnp.float32),  # NCHW
        "target": jax.random.normal(k_t, (N, K), dtype=jnp.float32),
    }

    params = {
        "w_img": jax.random.normal(k_w0, (Cin, Cmid), dtype=jnp.float32) * 0.1,
        "b_img": jnp.zeros((1, Cmid), dtype=jnp.float32),
        "w1": jax.random.normal(k_w1, (Cmid, Hdim), dtype=jnp.float32) * 0.1,
        "b1": jnp.zeros((1, Hdim), dtype=jnp.float32),
        "w2": jax.random.normal(k_w2, (Hdim, K), dtype=jnp.float32) * 0.1,
        "b2": jnp.zeros((1, K), dtype=jnp.float32),
    }

    # tile_rows=256 / sub_lanes=128 at this toy size -> grid (2, 4) with a 2-step inner
    # loop: exercises the resident SSE accumulator, the parallel batch axis and the
    # inner sub-tiling.  At production sizes leave the 4096/512 defaults (or larger).
    model = ModelWithLoss(params, tile_rows=256, sub_lanes=128)
    loss, loss_stats, next_est = model(batch, phase="train", epoch=10)

    jax.block_until_ready(loss)
    jax.block_until_ready(next_est)

    assert loss.shape == () and next_est.shape == (N, K)
    assert bool(jnp.isfinite(loss))

    # Compare against a pure-JAX f32 reference (bf16 MXU operands / bf16 target+est
    # streams -> loose tolerance).
    ref_loss, ref_est = _reference_forward(batch["input"], batch["target"], params,
                                           model.time_up(10))
    assert np.allclose(np.asarray(next_est), np.asarray(ref_est), atol=2e-2, rtol=2e-2)
    assert np.allclose(float(loss), float(ref_loss), atol=2e-2, rtol=2e-2)

    print("KERNEL_OK")
</pallas_src>

<mosaic_0001>
module attributes {stable_mosaic.version = 11 : i64} {
  func.func @_fused_kernel(%arg0: i32, %arg1: i32, %arg2: memref<1x4x256xf32, #tpu.memory_space<vmem>>, %arg3: memref<1x8x256xbf16, #tpu.memory_space<vmem>>, %arg4: memref<32x4xbf16, #tpu.memory_space<vmem>>, %arg5: memref<32x1xf32, #tpu.memory_space<vmem>>, %arg6: memref<32x32xbf16, #tpu.memory_space<vmem>>, %arg7: memref<32x1xf32, #tpu.memory_space<vmem>>, %arg8: memref<8x32xbf16, #tpu.memory_space<vmem>>, %arg9: memref<8x1xf32, #tpu.memory_space<vmem>>, %arg10: memref<1x8x256xbf16, #tpu.memory_space<vmem>>, %arg11: memref<1x8x128xf32, #tpu.memory_space<vmem>>) attributes {dimension_semantics = [#tpu.dimension_semantics<parallel>, #tpu.dimension_semantics<arbitrary>], iteration_bounds = array<i64: 2, 4>, scalar_prefetch = 0 : i64, scratch_operands = 0 : i64, tpu.core_type = #tpu.core_type<tc>, window_params = [{transform_indices = @transform_0, window_bounds = array<i64: 1, 4, 256>}, {transform_indices = @transform_1, window_bounds = array<i64: 1, 8, 256>}, {pipeline_mode = #tpu.pipeline_mode<synchronous>, transform_indices = @transform_2, window_bounds = array<i64: 32, 4>}, {pipeline_mode = #tpu.pipeline_mode<synchronous>, transform_indices = @transform_3, window_bounds = array<i64: 32, 1>}, {pipeline_mode = #tpu.pipeline_mode<synchronous>, transform_indices = @transform_4, window_bounds = array<i64: 32, 32>}, {pipeline_mode = #tpu.pipeline_mode<synchronous>, transform_indices = @transform_5, window_bounds = array<i64: 32, 1>}, {pipeline_mode = #tpu.pipeline_mode<synchronous>, transform_indices = @transform_6, window_bounds = array<i64: 8, 32>}, {pipeline_mode = #tpu.pipeline_mode<synchronous>, transform_indices = @transform_7, window_bounds = array<i64: 8, 1>}, {transform_indices = @transform_8, window_bounds = array<i64: 1, 8, 256>}, {transform_indices = @transform_9, window_bounds = array<i64: 1, 8, 128>}]} {
    %c0_i32 = arith.constant 0 : i32
    %0 = arith.cmpi eq, %arg1, %c0_i32 : i32
    %1 = arith.extui %0 : i1 to i32
    %c0_i32_0 = arith.constant 0 : i32
    %2 = arith.cmpi ne, %1, %c0_i32_0 : i32
    scf.if %2 {
      %cst_42 = arith.constant 0.000000e+00 : f32
      %82 = vector.broadcast %cst_42 : f32 to vector<8x128xf32>
      %c0_43 = arith.constant 0 : index
      %c0_44 = arith.constant 0 : index
      %c0_45 = arith.constant 0 : index
      %83 = vector.load %arg11[%c0_43, %c0_44, %c0_45] : memref<1x8x128xf32, #tpu.memory_space<vmem>>, vector<1x8x128xf32>
      %84 = vector.shape_cast %83 : vector<1x8x128xf32> to vector<8x128xf32>
      %85 = vector.shape_cast %82 : vector<8x128xf32> to vector<1x8x128xf32>
      tpu.vector_store %arg11[%c0_43, %c0_44, %c0_45], %85 {strides = array<i32>} : memref<1x8x128xf32, #tpu.memory_space<vmem>>, vector<1x8x128xf32>,
    } else {
    }
    %c0 = arith.constant 0 : index
    %c0_1 = arith.constant 0 : index
    %3 = vector.load %arg4[%c0, %c0_1] : memref<32x4xbf16, #tpu.memory_space<vmem>>, vector<32x4xbf16>
    %c0_2 = arith.constant 0 : index
    %c0_3 = arith.constant 0 : index
    %4 = vector.load %arg5[%c0_2, %c0_3] : memref<32x1xf32, #tpu.memory_space<vmem>>, vector<32x1xf32>
    %c0_4 = arith.constant 0 : index
    %c0_5 = arith.constant 0 : index
    %5 = vector.load %arg6[%c0_4, %c0_5] : memref<32x32xbf16, #tpu.memory_space<vmem>>, vector<32x32xbf16>
    %c0_6 = arith.constant 0 : index
    %c0_7 = arith.constant 0 : index
    %6 = vector.load %arg7[%c0_6, %c0_7] : memref<32x1xf32, #tpu.memory_space<vmem>>, vector<32x1xf32>
    %c0_8 = arith.constant 0 : index
    %c0_9 = arith.constant 0 : index
    %7 = vector.load %arg8[%c0_8, %c0_9] : memref<8x32xbf16, #tpu.memory_space<vmem>>, vector<8x32xbf16>
    %c0_10 = arith.constant 0 : index
    %c0_11 = arith.constant 0 : index
    %8 = vector.load %arg9[%c0_10, %c0_11] : memref<8x1xf32, #tpu.memory_space<vmem>>, vector<8x1xf32>
    %cst = arith.constant 0.000000e+00 : f32
    %9 = vector.broadcast %cst : f32 to vector<8x128xf32>
    %c0_i32_12 = arith.constant 0 : i32
    %c128_i32 = arith.constant 128 : i32
    %10 = arith.muli %c0_i32_12, %c128_i32 : i32
    %11 = tpu.assume_multiple %10, 128 : i32
    %c0_13 = arith.constant 0 : index
    %c0_14 = arith.constant 0 : index
    %12 = arith.index_cast %11 : i32 to index
    %13 = vector.load %arg2[%c0_13, %c0_14, %12] : memref<1x4x256xf32, #tpu.memory_space<vmem>>, vector<1x4x128xf32>
    %14 = vector.shape_cast %13 : vector<1x4x128xf32> to vector<4x128xf32>
    %15 = arith.truncf %14 : vector<4x128xf32> to vector<4x128xbf16>
    %cst_15 = arith.constant dense<0.000000e+00> : vector<32x128xf32>
    %16 = tpu.matmul %3, %15, %cst_15 {dimension_numbers = #tpu.dot_dimension_numbers<[1], [0], [0], [1], [0, 0, 1, 1], [], []>} : vector<32x4xbf16>, vector<4x128xbf16>, vector<32x128xf32> -> vector<32x128xf32>
    %17 = vector.broadcast %4 : vector<32x1xf32> to vector<32x128xf32>
    %18 = arith.addf %16, %17 : vector<32x128xf32>
    %cst_16 = arith.constant 0.000000e+00 : f32
    %19 = vector.broadcast %cst_16 : f32 to vector<32x128xf32>
    %20 = arith.maximumf %18, %19 : vector<32x128xf32>
    %21 = arith.truncf %20 : vector<32x128xf32> to vector<32x128xbf16>
    %cst_17 = arith.constant dense<0.000000e+00> : vector<32x128xf32>
    %22 = tpu.matmul %5, %21, %cst_17 {dimension_numbers = #tpu.dot_dimension_numbers<[1], [0], [0], [1], [0, 0, 1, 1], [], []>} : vector<32x32xbf16>, vector<32x128xbf16>, vector<32x128xf32> -> vector<32x128xf32>
    %23 = vector.broadcast %6 : vector<32x1xf32> to vector<32x128xf32>
    %24 = arith.addf %22, %23 : vector<32x128xf32>
    %cst_18 = arith.constant 0.000000e+00 : f32
    %25 = vector.broadcast %cst_18 : f32 to vector<32x128xf32>
    %26 = arith.maximumf %24, %25 : vector<32x128xf32>
    %27 = arith.truncf %26 : vector<32x128xf32> to vector<32x128xbf16>
    %cst_19 = arith.constant dense<0.000000e+00> : vector<8x128xf32>
    %28 = tpu.matmul %7, %27, %cst_19 {dimension_numbers = #tpu.dot_dimension_numbers<[1], [0], [0], [1], [0, 0, 1, 1], [], []>} : vector<8x32xbf16>, vector<32x128xbf16>, vector<8x128xf32> -> vector<8x128xf32>
    %29 = vector.broadcast %8 : vector<8x1xf32> to vector<8x128xf32>
    %30 = arith.addf %28, %29 : vector<8x128xf32>
    %31 = arith.truncf %30 : vector<8x128xf32> to vector<8x128xbf16>
    %c0_20 = arith.constant 0 : index
    %c0_21 = arith.constant 0 : index
    %32 = arith.index_cast %11 : i32 to index
    %33 = vector.load %arg10[%c0_20, %c0_21, %32] : memref<1x8x256xbf16, #tpu.memory_space<vmem>>, vector<1x8x128xbf16>
    %34 = vector.shape_cast %33 : vector<1x8x128xbf16> to vector<8x128xbf16>
    %35 = vector.shape_cast %31 : vector<8x128xbf16> to vector<1x8x128xbf16>
    tpu.vector_store %arg10[%c0_20, %c0_21, %32], %35 {strides = array<i32>} : memref<1x8x256xbf16, #tpu.memory_space<vmem>>, vector<1x8x128xbf16>,
    %c0_22 = arith.constant 0 : index
    %c0_23 = arith.constant 0 : index
    %36 = arith.index_cast %11 : i32 to index
    %37 = vector.load %arg3[%c0_22, %c0_23, %36] : memref<1x8x256xbf16, #tpu.memory_space<vmem>>, vector<1x8x128xbf16>
    %38 = vector.shape_cast %37 : vector<1x8x128xbf16> to vector<8x128xbf16>
    %39 = arith.extf %38 : vector<8x128xbf16> to vector<8x128xf32>
    %40 = arith.subf %30, %39 : vector<8x128xf32>
    %41 = arith.mulf %40, %40 : vector<8x128xf32>
    %42 = arith.addf %9, %41 : vector<8x128xf32>
    %c1_i32 = arith.constant 1 : i32
    %c128_i32_24 = arith.constant 128 : i32
    %43 = arith.muli %c1_i32, %c128_i32_24 : i32
    %44 = tpu.assume_multiple %43, 128 : i32
    %c0_25 = arith.constant 0 : index
    %c0_26 = arith.constant 0 : index
    %45 = arith.index_cast %44 : i32 to index
    %46 = vector.load %arg2[%c0_25, %c0_26, %45] : memref<1x4x256xf32, #tpu.memory_space<vmem>>, vector<1x4x128xf32>
    %47 = vector.shape_cast %46 : vector<1x4x128xf32> to vector<4x128xf32>
    %48 = arith.truncf %47 : vector<4x128xf32> to vector<4x128xbf16>
    %cst_27 = arith.constant dense<0.000000e+00> : vector<32x128xf32>
    %49 = tpu.matmul %3, %48, %cst_27 {dimension_numbers = #tpu.dot_dimension_numbers<[1], [0], [0], [1], [0, 0, 1, 1], [], []>} : vector<32x4xbf16>, vector<4x128xbf16>, vector<32x128xf32> -> vector<32x128xf32>
    %50 = vector.broadcast %4 : vector<32x1xf32> to vector<32x128xf32>
    %51 = arith.addf %49, %50 : vector<32x128xf32>
    %cst_28 = arith.constant 0.000000e+00 : f32
    %52 = vector.broadcast %cst_28 : f32 to vector<32x128xf32>
    %53 = arith.maximumf %51, %52 : vector<32x128xf32>
    %54 = arith.truncf %53 : vector<32x128xf32> to vector<32x128xbf16>
    %cst_29 = arith.constant dense<0.000000e+00> : vector<32x128xf32>
    %55 = tpu.matmul %5, %54, %cst_29 {dimension_numbers = #tpu.dot_dimension_numbers<[1], [0], [0], [1], [0, 0, 1, 1], [], []>} : vector<32x32xbf16>, vector<32x128xbf16>, vector<32x128xf32> -> vector<32x128xf32>
    %56 = vector.broadcast %6 : vector<32x1xf32> to vector<32x128xf32>
    %57 = arith.addf %55, %56 : vector<32x128xf32>
    %cst_30 = arith.constant 0.000000e+00 : f32
    %58 = vector.broadcast %cst_30 : f32 to vector<32x128xf32>
    %59 = arith.maximumf %57, %58 : vector<32x128xf32>
    %60 = arith.truncf %59 : vector<32x128xf32> to vector<32x128xbf16>
    %cst_31 = arith.constant dense<0.000000e+00> : vector<8x128xf32>
    %61 = tpu.matmul %7, %60, %cst_31 {dimension_numbers = #tpu.dot_dimension_numbers<[1], [0], [0], [1], [0, 0, 1, 1], [], []>} : vector<8x32xbf16>, vector<32x128xbf16>, vector<8x128xf32> -> vector<8x128xf32>
    %62 = vector.broadcast %8 : vector<8x1xf32> to vector<8x128xf32>
    %63 = arith.addf %61, %62 : vector<8x128xf32>
    %64 = arith.truncf %63 : vector<8x128xf32> to vector<8x128xbf16>
    %c0_32 = arith.constant 0 : index
    %c0_33 = arith.constant 0 : index
    %65 = arith.index_cast %44 : i32 to index
    %66 = vector.load %arg10[%c0_32, %c0_33, %65] : memref<1x8x256xbf16, #tpu.memory_space<vmem>>, vector<1x8x128xbf16>
    %67 = vector.shape_cast %66 : vector<1x8x128xbf16> to vector<8x128xbf16>
    %68 = vector.shape_cast %64 : vector<8x128xbf16> to vector<1x8x128xbf16>
    tpu.vector_store %arg10[%c0_32, %c0_33, %65], %68 {strides = array<i32>} : memref<1x8x256xbf16, #tpu.memory_space<vmem>>, vector<1x8x128xbf16>,
    %c0_34 = arith.constant 0 : index
    %c0_35 = arith.constant 0 : index
    %69 = arith.index_cast %44 : i32 to index
    %70 = vector.load %arg3[%c0_34, %c0_35, %69] : memref<1x8x256xbf16, #tpu.memory_space<vmem>>, vector<1x8x128xbf16>
    %71 = vector.shape_cast %70 : vector<1x8x128xbf16> to vector<8x128xbf16>
    %72 = arith.extf %71 : vector<8x128xbf16> to vector<8x128xf32>
    %73 = arith.subf %63, %72 : vector<8x128xf32>
    %74 = arith.mulf %73, %73 : vector<8x128xf32>
    %75 = arith.addf %42, %74 : vector<8x128xf32>
    %c2_i32 = arith.constant 2 : i32
    %c0_36 = arith.constant 0 : index
    %c0_37 = arith.constant 0 : index
    %c0_38 = arith.constant 0 : index
    %76 = vector.load %arg11[%c0_36, %c0_37, %c0_38] : memref<1x8x128xf32, #tpu.memory_space<vmem>>, vector<1x8x128xf32>
    %77 = vector.shape_cast %76 : vector<1x8x128xf32> to vector<8x128xf32>
    %78 = arith.addf %77, %75 : vector<8x128xf32>
    %c0_39 = arith.constant 0 : index
    %c0_40 = arith.constant 0 : index
    %c0_41 = arith.constant 0 : index
    %79 = vector.load %arg11[%c0_39, %c0_40, %c0_41] : memref<1x8x128xf32, #tpu.memory_space<vmem>>, vector<1x8x128xf32>
    %80 = vector.shape_cast %79 : vector<1x8x128xf32> to vector<8x128xf32>
    %81 = vector.shape_cast %78 : vector<8x128xf32> to vector<1x8x128xf32>
    tpu.vector_store %arg11[%c0_39, %c0_40, %c0_41], %81 {strides = array<i32>} : memref<1x8x128xf32, #tpu.memory_space<vmem>>, vector<1x8x128xf32>,
    return
  }
  func.func @transform_0(%arg0: i32, %arg1: i32) -> (i32, i32, i32) {
    %c0_i32 = arith.constant 0 : i32
    %c0_i32_0 = arith.constant 0 : i32
    return %arg0, %c0_i32, %arg1 : i32, i32, i32
  }
  func.func @transform_1(%arg0: i32, %arg1: i32) -> (i32, i32, i32) {
    %c0_i32 = arith.constant 0 : i32
    %c0_i32_0 = arith.constant 0 : i32
    return %arg0, %c0_i32, %arg1 : i32, i32, i32
  }
  func.func @transform_2(%arg0: i32, %arg1: i32) -> (i32, i32) {
    %c0_i32 = arith.constant 0 : i32
    %c0_i32_0 = arith.constant 0 : i32
    %c0_i32_1 = arith.constant 0 : i32
    return %c0_i32, %c0_i32_0 : i32, i32
  }
  func.func @transform_3(%arg0: i32, %arg1: i32) -> (i32, i32) {
    %c0_i32 = arith.constant 0 : i32
    %c0_i32_0 = arith.constant 0 : i32
    %c0_i32_1 = arith.constant 0 : i32
    return %c0_i32, %c0_i32_0 : i32, i32
  }
  func.func @transform_4(%arg0: i32, %arg1: i32) -> (i32, i32) {
    %c0_i32 = arith.constant 0 : i32
    %c0_i32_0 = arith.constant 0 : i32
    %c0_i32_1 = arith.constant 0 : i32
    return %c0_i32, %c0_i32_0 : i32, i32
  }
  func.func @transform_5(%arg0: i32, %arg1: i32) -> (i32, i32) {
    %c0_i32 = arith.constant 0 : i32
    %c0_i32_0 = arith.constant 0 : i32
    %c0_i32_1 = arith.constant 0 : i32
    return %c0_i32, %c0_i32_0 : i32, i32
  }
  func.func @transform_6(%arg0: i32, %arg1: i32) -> (i32, i32) {
    %c0_i32 = arith.constant 0 : i32
    %c0_i32_0 = arith.constant 0 : i32
    %c0_i32_1 = arith.constant 0 : i32
    return %c0_i32, %c0_i32_0 : i32, i32
  }
  func.func @transform_7(%arg0: i32, %arg1: i32) -> (i32, i32) {
    %c0_i32 = arith.constant 0 : i32
    %c0_i32_0 = arith.constant 0 : i32
    %c0_i32_1 = arith.constant 0 : i32
    return %c0_i32, %c0_i32_0 : i32, i32
  }
  func.func @transform_8(%arg0: i32, %arg1: i32) -> (i32, i32, i32) {
    %c0_i32 = arith.constant 0 : i32
    %c0_i32_0 = arith.constant 0 : i32
    return %arg0, %c0_i32, %arg1 : i32, i32, i32
  }
  func.func @transform_9(%arg0: i32, %arg1: i32) -> (i32, i32, i32) {
    %c0_i32 = arith.constant 0 : i32
    %c0_i32_0 = arith.constant 0 : i32
    %c0_i32_1 = arith.constant 0 : i32
    return %arg0, %c0_i32, %c0_i32_0 : i32, i32, i32
  }
}

</mosaic_0001>

<bundles_post_ra>
// kernel: fused_forward.1
= control target key start
LH: loop header
LB: loop body
LE: loop exit
PB: predicated region body
PF: predicated region fallthrough
CT: control target
= control target key end

     0   :  { %s1240_s30 = smov 0   ;;  %s1242_s10 = smov 0   ;;  %s1386_s0 = inlined_call_operand.vmem [shape: f32[2,4,1024], index: 0, kind: input, shape index: {}]   ;;  %s1387_s1 = inlined_call_operand.vmem [shape: bf16[2,8,1024], index: 1, kind: input, shape index: {}]   ;;  %s1388_s2 = inlined_call_operand.vmem [shape: bf16[32,4], index: 2, kind: input, shape index: {}]   ;;  %s1389_s3 = inlined_call_operand.vmem [shape: f32[32,1], index: 3, kind: input, shape index: {}]   ;;  %s1390_s4 = inlined_call_operand.vmem [shape: bf16[32,32], index: 4, kind: input, shape index: {}]   ;;  %s1391_s5 = inlined_call_operand.vmem [shape: f32[32,1], index: 5, kind: input, shape index: {}]   ;;  %s1392_s6 = inlined_call_operand.vmem [shape: bf16[8,32], index: 6, kind: input, shape index: {}]   ;;  %s1393_s7 = inlined_call_operand.vmem [shape: f32[8,1], index: 7, kind: input, shape index: {}]   ;;  %s1394_s8 = inlined_call_operand.vmem [shape: bf16[2,8,1024], index: 8, kind: output, shape index: {0}]   ;;  %s1395_s9 = inlined_call_operand.vmem [shape: f32[2,8,128], index: 9, kind: output, shape index: {1}]  }
   0x1   :  { %s1244_s11 = smov 0   ;;  %s1246_s12 = smov 0  }
   0x2   :  { %s1248_s13 = smov 0  }
   0x3 LB: > { %s29_s14 = sadd.s32 1, %s1176_s11  ;;  %s32_s15 = sadd.s32 1, %s1180_s12  ;;  %s1184_s13 = sphi %s1248_s13, %s20_s13   ;;  %s1180_s12 = sphi %s1246_s12, %s1399_s12   ;;  %s1176_s11 = sphi %s1244_s11, %s1398_s11   ;;  %s1172_s10 = sphi %s1242_s10, %s1397_s10   ;;  %s1168_s30 = sphi %s1240_s30, %s1396_s30  }
   0x4   : > { %p30_p0 = scmp.ge.s32.totalorder %s29_s14, 4  ;;  %p999_p1 = scmp.ge.s32.totalorder %s1184_s13, 1 }
   0x5   : > { %p328_p2 = scmp.lt.s32.totalorder %s1184_s13, 9 }
   0x6   : > { %s1401_s14 = smov (%p30_p0, %s29_s14), 0  ;;  %s1403_s15 = smov (!%p30_p0, %s32_s15), %s1180_s12 }
   0x7   : > { %p329_p3 = pnand %p999_p1, %p328_p2  ;;  %p34_p4 = scmp.ge.s32.totalorder %s1403_s15, 2 }
   0x8   : > { %s1000_s16 = sshll.u32 (!%p329_p3), %s1168_s30, 1  ;;  %p386_p5 = scmp.lt.s32.totalorder (!%p329_p3), %s1172_s10, 1 }
   0x9   : > { %s1405_s15 = smov (%p34_p4, %s1403_s15), 0  ;;  %332 = sbr.rel (%p329_p3) target bundleno = 948 (0x3b4), region = 52 }
   0xa   : > { %p388_p6 = scmp.lt.s32.totalorder (!%p329_p3), %s1000_s16, 7  ;;  %p1010_p7 = scmp.ne.s32.totalorder (!%p329_p3), %s1168_s30, 0 }
  0x10   : > { %s1407_s10 = smov (!%p386_p5, %s1172_s10), 1  ;;  %s1409_s16 = smov (!%p388_p6, %s1000_s16), 7 }
  0x11   : > { %s1001_s17 = sshll.u32 %s1407_s10, 3  ;;  %423 = sbr.rel (%p1010_p7) target bundleno = 24 (0x18), region = 56  ;;  %v1186_v0 = vmov (!%p1010_p7), 0.0  }
  0x12   : > { %s391_s18 = sadd.s32 %s1001_s17, %s1409_s16  ;;  %s1273_s21 = scalar_lea.vmem %s1395_s9, %s1001_s17 }
  0x13   : > { %s1275_s22 = sshll.u32 %s391_s18, 2  ;;  %424 = vst [vmem:[%s1273_s21] sm:$0xff] (!%p1010_p7), %v1186_v0 }
  0x14   : > { %s1281_s25 = scalar_lea.vmem %s1386_s0, %s1275_s22  ;;  %s403_s28 = scalar_lea.vmem %s1387_s1, %s1275_s22 }
  0x15   : > { %s1291_s16 = scalar_lea.vmem %s1394_s8, %s1275_s22 }
  0x18 PF: > { %v443_v1 = vld [vmem:[%s1281_s25] sm:$0xf]  ;;  %vm482_vm0 = vcmask 1041408   ;;  %vm475_vm1 = vcmask 31744   ;;  %v1143_v6 = vld [vmem:[%s1388_s2 + $0x8] sm:$0xff]   ;;  %v1187_v7 = vmov 0  }
  0x19   : > { %v1142_v2 = vld [vmem:[%s1388_s2] sm:$0xff]   ;;  %v444_v3 = vpack.c.bf16 %v443_v1, %v443_v1  ;;  %1140 = vset.pattern.permute.xlu0 %v1187_v7  ;;  %v431_v8 = vld [vmem:[%s1389_s3 + $0x10] sm:$0xff]  ;;  %v430_v9 = vld [vmem:[%s1389_s3 + $0x8] sm:$0xff]  ;;  %1141 = vset.pattern.permute.xlu1 %v1187_v7  ;;  %vm571_vm2 = vcmask 261120   ;;  %v1188_v39 = vmov 0.0   ;;  %vm1189_vm3 = vmmov 0  }
  0x1a   : > { %1052 = vmatprep.mubr.msk.bf16.mxu0 %vm475_vm1, %v1142_v2  ;;  %v429_v4 = vld [vmem:[%s1389_s3] sm:$0xff]  ;;  %457 = vperm.xlu1 %1141, %v431_v8   ;;  %v432_v10 = vld [vmem:[%s1389_s3 + $0x18] sm:$0xff]  ;;  %v438_v12 = vld [vmem:[%s1391_s5 + $0x8] sm:$0xff] }
  0x1b   : > { %1094 = vmatprep.subr.msk.bf16.mxu0 %vm482_vm0, %v444_v3  ;;  %v484_v5 = vsel %vm482_vm0, %v444_v3, 0  ;;  %447 = vperm.xlu0 %1140, %v429_v4   ;;  %v437_v11 = vld [vmem:[%s1391_s5] sm:$0xff]  ;;  %v439_v13 = vld [vmem:[%s1391_s5 + $0x10] sm:$0xff]  ;;  %v440_v14 = vld [vmem:[%s1391_s5 + $0x18] sm:$0xff] }
  0x1c   : > { %1051 = vmatpush3.bf16.msra.mxu0 %v484_v5  ;;  %v442_v15 = vld [vmem:[%s1393_s7] sm:$0xff]  ;;  %v1145_v37 = vld [vmem:[%s1390_s4 + $0x8] sm:$0xff]  }
  0x1d   : > { %v1335_v16 = vld [vmem:[%s1390_s4] sm:$0xff]   ;;  %1064 = vmatprep.subr.bf16.mxu0 %v1188_v39 }
  0x1e   : > { %462 = vperm.xlu1 %1141, %v432_v10   ;;  %1060 = vmatprep.mubr.msk.bf16.mxu1 %vm571_vm2, %v1335_v16  ;;  %v1020_v35 = vld [vmem:[%s1281_s25 + $0x4] sm:$0xf] }
  0x1f   : > { %1053 = vmatmul.mubr.msk.bf16.vlgmr.msra.gmra.mrb[0].mxu0 %vm475_vm1, %v1143_v6  ;;  %452 = vperm.xlu0 %1140, %v430_v9   ;;  %v690_v36 = vpack.c.bf16 %v1020_v35, %v1020_v35 }
  0x20   : > { %1068 = vmatprep.mubr.msk.bf16.mxu0 %vm1189_vm3, %v1188_v39 }
  0x21   : > { %v692_v38 = vsel %vm482_vm0, %v690_v36, 0 }
  0x22   : > { %548 = vperm.xlu1 %1141, %v438_v12  }
  0x23   : > { %543 = vperm.xlu0 %1140, %v437_v11  }
  0x26   : > { %558 = vperm.xlu1 %1141, %v440_v14  }
  0x27   : > { %553 = vperm.xlu0 %1140, %v439_v13  }
  0x2b   : > { %635 = vperm.xlu0 %1140, %v442_v15  }
  0x99   : > { %v458_v17 = vpop.permute.xlu1 %457 }
  0x9a   : > { %v448_v18 = vpop.permute.xlu0 %447 }
  0x9d   : > { %v463_v22 = vpop.permute.xlu1 %462 }
  0x9e   : > { %v453_v25 = vpop.permute.xlu0 %452 }
  0xa1   : > { %v549_v41 = vpop.permute.xlu1 %548 }
  0xa2   : > { %v544_v40 = vpop.permute.xlu0 %543 }
  0xa5   : > { %v559_v46 = vpop.permute.xlu1 %558 }
  0xa6   : > { %v554_v42 = vpop.permute.xlu0 %553 }
  0xaa   : > { %v636_v9 = vpop.permute.xlu0 %635 }
  0xf2   : > { %v1054_v19 = vpop.f32.mrb[0].mxu0 }
  0xf3   : > { %v529_v20 = vadd.f32 %v1054_v19, %v458_v17  ;;  %v520_v21 = vpop.f32.mrb[1].mxu0 }
  0xf4   : > { %v521_v23 = vadd.f32 %v520_v21, %v448_v18  ;;  %v1055_v24 = vpop.f32.mrb[2].mxu0 }
  0xf5   : > { %v532_v26 = vadd.f32 %v1055_v24, %v463_v22  ;;  %v523_v27 = vpop.f32.mrb[3].mxu0  ;;  %v537_v29 = vmax.f32 %v529_v20, 0.0 }
  0xf6   : > { %v524_v28 = vadd.f32 %v523_v27, %v453_v25  ;;  %v535_v31 = vmax.f32 %v521_v23, 0.0 }
  0xf7   : > { %v538_v30 = vmax.f32 %v532_v26, 0.0 }
  0xf8   : > { %v536_v32 = vmax.f32 %v524_v28, 0.0 }
  0xf9   : > { %v540_v33 = vpack.c.bf16 %v538_v30, %v537_v29  ;;  %v683_v30 = vld [vmem:[%s403_s28] sm:$0xff]  }
  0xfa   : > { %v539_v34 = vpack.c.bf16 %v536_v32, %v535_v31  ;;  %v684_v31 = vunpack.c.l.bf16 %v683_v30  ;;  %v849_v32 = vunpack.c.h.bf16 %v683_v30 }
  0xfc   : > { %1056 = vmatprep.subr.bf16.mxu1 %v539_v34 }
  0xfd   : > { %1057 = vmatpush3.bf16.msra.mxu1 %v539_v34 }
  0xfe   : > { %1058 = vmatprep.subr.bf16.mxu1 %v540_v33 }
 0x101   : > { %1059 = vmatpush3.bf16.msra.mxu1 %v540_v33 }
 0x102   : > { %1095 = vmatprep.subr.msk.bf16.mxu1 %vm482_vm0, %v690_v36 }
 0x104   : > { %1061 = vmatmul.mubr.msk.bf16.vlgmr.msra.gmra.mrb[0].mxu1 %vm571_vm2, %v1145_v37 }
 0x105   : > { %1073 = vmatpush3.bf16.msra.mxu1 %v692_v38  ;;  %1074 = vmatprep.mubr.msk.bf16.mxu1 %vm475_vm1, %v1142_v2 }
 0x106   : > { %1086 = vmatprep.subr.bf16.mxu1 %v1188_v39 }
 0x10c   : > { %1075 = vmatmul.mubr.msk.bf16.vlgmr.msra.gmra.mrb[4].mxu1 %vm475_vm1, %v1143_v6  ;;  %v441_v6 = vld [vmem:[%s1392_s6] sm:$0xf] }
 0x10d   : > { %1090 = vmatprep.mubr.msk.bf16.mxu1 %vm1189_vm3, %v1188_v39 }
 0x1d7   : > { %v1062_v43 = vpop.f32.mrb[0].mxu1 }
 0x1d8   : > { %v621_v44 = vadd.f32 %v1062_v43, %v554_v42  ;;  %v612_v45 = vpop.f32.mrb[1].mxu1  ;;  %v853_v43 = vld [vmem:[%s1273_s21] sm:$0xff] }
 0x1d9   : > { %v613_v47 = vadd.f32 %v612_v45, %v544_v40  ;;  %v1063_v48 = vpop.f32.mrb[2].mxu1 }
 0x1da   : > { %v624_v49 = vadd.f32 %v1063_v48, %v559_v46  ;;  %v615_v50 = vpop.f32.mrb[3].mxu1  ;;  %v629_v52 = vmax.f32 %v621_v44, 0.0 }
 0x1db   : > { %v616_v51 = vadd.f32 %v615_v50, %v549_v41  ;;  %v627_v54 = vmax.f32 %v613_v47, 0.0 }
 0x1dc   : > { %v630_v53 = vmax.f32 %v624_v49, 0.0 }
 0x1dd   : > { %v628_v55 = vmax.f32 %v616_v51, 0.0 }
 0x1de   : > { %v632_v56 = vpack.c.bf16 %v630_v53, %v629_v52 }
 0x1df   : > { %v631_v57 = vpack.c.bf16 %v628_v55, %v627_v54  ;;  %v1076_v58 = vpop.f32.mrb[4].mxu1 }
 0x1e0   : > { %v737_v59 = vadd.f32 %v1076_v58, %v458_v17  ;;  %v728_v60 = vpop.f32.mrb[5].mxu1 }
 0x1e1   : > { %v729_v61 = vadd.f32 %v728_v60, %v448_v18  ;;  %1065 = vmatpush3.bf16.msra.mxu0 %v631_v57  ;;  %v1077_v62 = vpop.f32.mrb[6].mxu1 }
 0x1e2   : > { %v740_v63 = vadd.f32 %v1077_v62, %v463_v22  ;;  %v731_v0 = vpop.f32.mrb[7].mxu1  ;;  %1066 = vmatprep.subr.bf16.mxu0 %v1188_v39  ;;  %v745_v2 = vmax.f32 %v737_v59, 0.0 }
 0x1e3   : > { %v732_v1 = vadd.f32 %v731_v0, %v453_v25  ;;  %v743_v4 = vmax.f32 %v729_v61, 0.0 }
 0x1e4   : > { %v746_v3 = vmax.f32 %v740_v63, 0.0 }
 0x1e5   : > { %v744_v5 = vmax.f32 %v732_v1, 0.0  ;;  %1067 = vmatpush3.bf16.msra.mxu0 %v632_v56 }
 0x1e6   : > { %v748_v7 = vpack.c.bf16 %v746_v3, %v745_v2 }
 0x1e7   : > { %v747_v8 = vpack.c.bf16 %v744_v5, %v743_v4 }
 0x1e8   : > { %1069 = vmatmul.mubr.msk.bf16.vlgmr.msra.gmra.mrb[4].mxu0 %vm571_vm2, %v441_v6 }
 0x1e9   : > { %1078 = vmatprep.subr.bf16.mxu0 %v747_v8  ;;  %1082 = vmatprep.mubr.msk.bf16.mxu0 %vm571_vm2, %v1335_v16 }
 0x1ea   : > { %1079 = vmatpush3.bf16.msra.mxu0 %v747_v8 }
 0x1eb   : > { %1080 = vmatprep.subr.bf16.mxu0 %v748_v7 }
 0x1ee   : > { %1081 = vmatpush3.bf16.msra.mxu0 %v748_v7 }
 0x1f1   : > { %1083 = vmatmul.mubr.msk.bf16.vlgmr.msra.gmra.mrb[8].mxu0 %vm571_vm2, %v1145_v37 }
 0x2bb   : > { %v675_v10 = vpop.f32.mrb[4].mxu0 }
 0x2bc   : > { %v676_v11 = vadd.f32 %v675_v10, %v636_v9  ;;  %v1070_v12 = vpop.f32.mrb[5].mxu0 }
 0x2bd   : > { %v678_v13 = vpop.f32.mrb[6].mxu0 }
 0x2be   : > { %v681_v14 = vpack.c.bf16 %v676_v11, %v676_v11  ;;  %v1071_v15 = vpop.f32.mrb[7].mxu0  ;;  %v685_v34 = vsub.f32 %v676_v11, %v684_v31 }
 0x2c0   : > { %682 = vst [vmem:[%s1291_s16] sm:$0xf] %v681_v14 }
 0x2c4   : > { %v1084_v17 = vpop.f32.mrb[8].mxu0 }
 0x2c5   : > { %v792_v18 = vadd.f32 %v1084_v17, %v554_v42  ;;  %v783_v19 = vpop.f32.mrb[9].mxu0 }
 0x2c6   : > { %v784_v20 = vadd.f32 %v783_v19, %v544_v40  ;;  %v1085_v21 = vpop.f32.mrb[10].mxu0 }
 0x2c7   : > { %v795_v16 = vadd.f32 %v1085_v21, %v559_v46  ;;  %v786_v22 = vpop.f32.mrb[11].mxu0  ;;  %v800_v24 = vmax.f32 %v792_v18, 0.0 }
 0x2c8   : > { %v787_v23 = vadd.f32 %v786_v22, %v549_v41  ;;  %v798_v26 = vmax.f32 %v784_v20, 0.0  ;;  %v686_v41 = vmul.f32 %v685_v34, %v685_v34 }
 0x2c9   : > { %v801_v25 = vmax.f32 %v795_v16, 0.0 }
 0x2ca   : > { %v799_v27 = vmax.f32 %v787_v23, 0.0 }
 0x2cb   : > { %v803_v28 = vpack.c.bf16 %v801_v25, %v800_v24 }
 0x2cc   : > { %v802_v29 = vpack.c.bf16 %v799_v27, %v798_v26 }
 0x2ce   : > { %1087 = vmatpush3.bf16.msra.mxu1 %v802_v29 }
 0x2cf   : > { %1088 = vmatprep.subr.bf16.mxu1 %v1188_v39 }
 0x2d2   : > { %1089 = vmatpush3.bf16.msra.mxu1 %v803_v28 }
 0x2d5   : > { %1091 = vmatmul.mubr.msk.bf16.vlgmr.msra.gmra.mrb[8].mxu1 %vm571_vm2, %v441_v6 }
 0x3a8   : > { %v838_v33 = vpop.f32.mrb[8].mxu1 }
 0x3a9   : > { %v839_v35 = vadd.f32 %v838_v33, %v636_v9  ;;  %v1092_v36 = vpop.f32.mrb[9].mxu1 }
 0x3aa   : > { %v841_v37 = vpop.f32.mrb[10].mxu1 }
 0x3ab   : > { %v844_v38 = vpack.c.bf16 %v839_v35, %v839_v35  ;;  %v850_v40 = vsub.f32 %v839_v35, %v849_v32  ;;  %v1093_v39 = vpop.f32.mrb[11].mxu1 }
 0x3ad   : > { %1026 = vst [vmem:[%s1291_s16 + $0x4] sm:$0xf] %v844_v38  ;;  %v851_v42 = vmul.f32 %v850_v40, %v850_v40 }
 0x3af   : > { %v852_v44 = vadd.f32 %v851_v42, %v686_v41 }
 0x3b1   : > { %v854_v45 = vadd.f32 %v853_v43, %v852_v44 }
 0x3b3   : > { %855 = vst [vmem:[%s1273_s21] sm:$0xff] %v854_v45 }
 0x3b4 PF: > { %s20_s13 = sadd.s32 1, %s1184_s13   ;;  %s1396_s30 = smov %s1176_s11 }
 0x3b5   : > { %p17_p8 = scmp.ge.s32.totalorder %s20_s13, 10   ;;  %s1397_s10 = smov %s1180_s12 }
 0x3b6   : > { %s1398_s11 = smov %s1401_s14  ;;  %s1399_s12 = smov %s1405_s15 }
 0x3b7   :  { %19 = sbr.rel (!%p17_p8) target bundleno = 3 (0x3), region = 104 }

</bundles_post_ra>
